<compile_context>
chip_gen: v5e
topology: v5e:2x2
jax: 0.10.0
libtpu: 0.0.40
codegen_flags: <defaults>
</compile_context>

<pallas_src>
import numpy as np
import jax
import jax.numpy as jnp
from jax.experimental import pallas as pl
from jax.experimental.pallas import tpu as pltpu


# ----------------------- fused encoder + pool + classifier kernel ----------
def fused_mil_kernel(x_ref, wf_ref, aux_ref, o_ref):
    # x_ref  : (VCT, B*HW)  all samples packed on the lane axis (lane-dense), f32 or bf16
    # wf_ref : (D, VCT)     fused weight  W1^T @ (T-tiled encoder W)^T / (V*T)
    # aux_ref: (D, 3) f32   col0 = fused bias bf, col1 = w2, aux[0, 2] = b2
    # o_ref  : (1, B*HW)    per-(sample, position) MIL logits, one unmasked lane-dense row
    pre = jnp.dot(wf_ref[...], x_ref[...],
                  preferred_element_type=jnp.float32)             # (D, B*HW) f32 accumulate
    h = jnp.tanh(pre + aux_ref[:, 0:1])                           # (D, B*HW)
    # Final (1, D) "matmul" as a VPU multiply + sublane reduction (no MXU drain tail).
    o_ref[...] = jnp.sum(h * aux_ref[:, 1:2], axis=0, keepdims=True) + aux_ref[0:1, 2:3]


# ----------------------- one-time weight preparation ------------------------
def prepare_fused_params(params, V, Cin, T, compute_dtype=jnp.float32):
    """Fold the (V,T) mean-pool and W1 into the pointwise encoder weight. Done ONCE at init."""
    E, D = params["w1"].shape
    VCT = V * Cin * T
    w_flat = params["w_enc"].reshape(V * Cin, E)                                  # (V*Cin, E)
    w_rep = jnp.broadcast_to(w_flat[:, None, :], (V * Cin, T, E)).reshape(VCT, E)  # (VCT, E)
    # Wf[d, (v,c,t)] = sum_e w1[e,d] * w_enc[v,c,e] / (V*T)   (mean over V,T folded in)
    wf = (params["w1"].T @ w_rep.T) / float(V * T)                                # (D, VCT)
    b_mean = jnp.mean(params["b_enc"], axis=0)                                    # (E,)
    bf = params["w1"].T @ b_mean + params["b1"].reshape(-1)                       # (D,)
    w2 = params["w2"].reshape(-1)                                                 # (D,)
    b2 = params["b2"].reshape(())                                                 # scalar
    aux = jnp.zeros((D, 3), jnp.float32)
    aux = aux.at[:, 0].set(bf).at[:, 1].set(w2).at[0, 2].set(b2)
    return dict(wf=jnp.asarray(wf, compute_dtype), aux=aux, VCT=VCT, D=D,
                compute_dtype=compute_dtype)


# ----------------------- fused forward over all spatial positions ----------
def mil_logits_all_positions(x_d, fused):
    """Fused encoder + mean-pool + classifier: per-(sample, position) logits (B, H*W)."""
    B, V, Cin, T, H, W = x_d.shape
    HW = H * W
    VCT = fused["VCT"]
    # Pack the B samples side-by-side on the lane axis -> (VCT, B*HW); lane-dense in & out.
    x_packed = jnp.transpose(x_d.reshape(B, VCT, HW), (1, 0, 2)).reshape(VCT, B * HW)
    x_packed = x_packed.astype(fused["compute_dtype"])

    vmem = pl.BlockSpec(memory_space=pltpu.MemorySpace.VMEM)   # full-array blocks, no grid
    out = pl.pallas_call(
        fused_mil_kernel,
        out_shape=jax.ShapeDtypeStruct((1, B * HW), jnp.float32),
        in_specs=[vmem, vmem, vmem],
        out_specs=vmem,
    )(x_packed, fused["wf"], fused["aux"])
    return out.reshape(B, HW)


# ----------------------- MIL_model.forward --------------------------------
def mil_forward(x_d, mask_extreme, fused):
    """Mirrors MIL_model.forward: returns (z_n, z_p) lists of per-sample (K, 1) logits."""
    logits = mil_logits_all_positions(x_d, fused)              # (B, H*W) on device
    logits_host = np.asarray(jax.device_get(logits))           # ONE tiny transfer (few KB)
    z_n, z_p = [], []
    for i in range(len(mask_extreme)):
        m = np.asarray(mask_extreme[i]).reshape(-1)            # host-side static (H, W) mask
        z_n.append(logits_host[i, m == 0][:, None])            # (K_neg, 1)
        z_p.append(logits_host[i, m != 0][:, None])            # (K_pos, 1)
    return z_n, z_p


# ----------------------- pure-JAX (non-fused) reference --------------------
def mil_forward_ref(x_d, mask_extreme, params):
    z = (jnp.einsum("bvcthw,vce->bvtehw", x_d, params["w_enc"])
         + params["b_enc"][None, :, None, :, None, None])              # (B,V,T,E,H,W)
    z = jnp.transpose(z, (1, 2, 3, 0, 4, 5))                           # (V,T,E,B,H,W)
    V, T, E, B, H, W = z.shape

    def cls(zi):                                                       # (K, V, E, T)
        pooled = jnp.mean(zi, axis=(1, 3))
        h = jnp.tanh(pooled @ params["w1"] + params["b1"])
        return h @ params["w2"] + params["b2"]

    z_n, z_p = [], []
    for i in range(len(mask_extreme)):
        m = np.asarray(mask_extreme[i]).reshape(-1)
        zi = z[:, :, :, i].reshape(V, T, E, H * W)
        z_n.append(cls(jnp.transpose(zi[:, :, :, np.where(m == 0)[0]], (3, 0, 2, 1))))
        z_p.append(cls(jnp.transpose(zi[:, :, :, np.where(m != 0)[0]], (3, 0, 2, 1))))
    return z_n, z_p


# ----------------------- params ------------------------------------------
def init_params(key, V, Cin, E, D):
    gain = 0.02   # matches _init_weights: normal(0, 0.02) for Conv/Linear, zero biases
    k1, k2, k3 = jax.random.split(key, 3)
    return dict(
        w_enc=gain * jax.random.normal(k1, (V, Cin, E), jnp.float32),
        b_enc=jnp.zeros((V, E), jnp.float32),
        w1=gain * jax.random.normal(k2, (E, D), jnp.float32),
        b1=jnp.zeros((1, D), jnp.float32),
        w2=gain * jax.random.normal(k3, (D, 1), jnp.float32),
        b2=jnp.zeros((1, 1), jnp.float32),
    )


if __name__ == "__main__":
    B, V, Cin, T, H, W = 2, 2, 4, 4, 8, 8    # VCT = 32, B*HW = 128 (one full lane row)
    E, D = 32, 16

    key = jax.random.PRNGKey(0)
    kx, kp = jax.random.split(key)
    x_d = jax.random.normal(kx, (B, V, Cin, T, H, W), jnp.float32)
    params = init_params(kp, V, Cin, E, D)

    # deterministic per-sample extreme-event masks over the (H, W) plane (host-static)
    r, c = np.meshgrid(np.arange(H), np.arange(W), indexing="ij")
    mask_extreme = [((r + c + i) % 3 == 0).astype(np.int32) for i in range(B)]

    # --- f32 path (exact against the reference) ---
    fused_f32 = prepare_fused_params(params, V, Cin, T, compute_dtype=jnp.float32)
    z_n, z_p = mil_forward(x_d, mask_extreme, fused_f32)
    jax.block_until_ready(jnp.asarray(z_n[0])) if z_n[0].size else None

    z_n_ref, z_p_ref = mil_forward_ref(x_d, mask_extreme, params)
    jax.block_until_ready(z_n_ref)
    jax.block_until_ready(z_p_ref)
    for a, b in zip(z_n + z_p, z_n_ref + z_p_ref):
        np.testing.assert_allclose(np.asarray(a), np.asarray(b), rtol=1e-4, atol=1e-5)

    # --- bf16-operand path (v6e/v7x recommendation: halve x HBM bytes, f32 accumulate) ---
    fused_bf16 = prepare_fused_params(params, V, Cin, T, compute_dtype=jnp.bfloat16)
    z_n_b, z_p_b = mil_forward(x_d, mask_extreme, fused_bf16)
    for a, b in zip(z_n_b + z_p_b, z_n_ref + z_p_ref):
        np.testing.assert_allclose(np.asarray(a), np.asarray(b), rtol=5e-2, atol=5e-4)

    print("KERNEL_OK")
</pallas_src>

<mosaic_0001>
module attributes {stable_mosaic.version = 11 : i64} {
  func.func @fused_mil_kernel(%arg0: memref<32x128xf32, #tpu.memory_space<vmem>>, %arg1: memref<16x32xf32, #tpu.memory_space<vmem>>, %arg2: memref<16x3xf32, #tpu.memory_space<vmem>>, %arg3: memref<1x128xf32, #tpu.memory_space<vmem>>) attributes {dimension_semantics = [], scalar_prefetch = 0 : i64, scratch_operands = 0 : i64, tpu.core_type = #tpu.core_type<tc>} {
    %c0 = arith.constant 0 : index
    %c0_0 = arith.constant 0 : index
    %0 = vector.load %arg1[%c0, %c0_0] : memref<16x32xf32, #tpu.memory_space<vmem>>, vector<16x32xf32>
    %c0_1 = arith.constant 0 : index
    %c0_2 = arith.constant 0 : index
    %1 = vector.load %arg0[%c0_1, %c0_2] : memref<32x128xf32, #tpu.memory_space<vmem>>, vector<32x128xf32>
    %cst = arith.constant dense<0.000000e+00> : vector<16x128xf32>
    %2 = tpu.matmul %0, %1, %cst {dimension_numbers = #tpu.dot_dimension_numbers<[1], [0], [0], [1], [0, 0, 1, 1], [], []>} : vector<16x32xf32>, vector<32x128xf32>, vector<16x128xf32> -> vector<16x128xf32>
    %c0_3 = arith.constant 0 : index
    %c0_4 = arith.constant 0 : index
    %3 = vector.load %arg2[%c0_3, %c0_4] : memref<16x3xf32, #tpu.memory_space<vmem>>, vector<16x1xf32>
    %4 = vector.broadcast %3 : vector<16x1xf32> to vector<16x128xf32>
    %5 = arith.addf %2, %4 : vector<16x128xf32>
    %6 = math.tanh %5 : vector<16x128xf32>
    %c0_5 = arith.constant 0 : index
    %c1 = arith.constant 1 : index
    %7 = vector.load %arg2[%c0_5, %c1] : memref<16x3xf32, #tpu.memory_space<vmem>>, vector<16x1xf32>
    %8 = vector.broadcast %7 : vector<16x1xf32> to vector<16x128xf32>
    %9 = arith.mulf %6, %8 : vector<16x128xf32>
    %cst_6 = arith.constant dense<0.000000e+00> : vector<128xf32>
    %10 = vector.multi_reduction <add>, %9, %cst_6 [0] : vector<16x128xf32> to vector<128xf32>
    %11 = vector.shape_cast %10 : vector<128xf32> to vector<1x128xf32>
    %c0_7 = arith.constant 0 : index
    %c2 = arith.constant 2 : index
    %12 = vector.load %arg2[%c0_7, %c2] : memref<16x3xf32, #tpu.memory_space<vmem>>, vector<1x1xf32>
    %13 = vector.broadcast %12 : vector<1x1xf32> to vector<1x128xf32>
    %14 = arith.addf %11, %13 : vector<1x128xf32>
    %c0_8 = arith.constant 0 : index
    %c0_9 = arith.constant 0 : index
    %15 = vector.load %arg3[%c0_8, %c0_9] : memref<1x128xf32, #tpu.memory_space<vmem>>, vector<1x128xf32>
    tpu.vector_store %arg3[%c0_8, %c0_9], %14 {strides = array<i32>} : memref<1x128xf32, #tpu.memory_space<vmem>>, vector<1x128xf32>,
    return
  }
}

</mosaic_0001>

<bundles_post_ra>
// kernel: tpu_custom_call.1
= control target key start
LH: loop header
LB: loop body
LE: loop exit
PB: predicated region body
PF: predicated region fallthrough
CT: control target
= control target key end

     0   :  { %8 = vsyncpa [#allocation3], 0  ;;  %s244_s0 = inlined_call_operand.hbm [shape: f32[32,128], index: 0, kind: input, shape index: {}]   ;;  %s245_s1 = inlined_call_operand.vmem [shape: f32[16,32], index: 1, kind: input, shape index: {}]   ;;  %s246_s2 = inlined_call_operand.vmem [shape: f32[16,3], index: 2, kind: input, shape index: {}]   ;;  %s247_s3 = inlined_call_operand.hbm [shape: f32[1,128], index: 3, kind: output, shape index: {}]  }
   0x1   :  { %9 = vsyncpa [#allocation4], 0  ;;  %s14_s14 = sshll.u32 %s244_s0, 4  ;;  %s196_s15 = smov [#allocation2]   ;;  %s15_s14 = int_to_ptr.hbm [resolvable:$true] %s14_s14 }
   0x2   :  { %s16_s16 = sshll.u32 %s196_s15, 4  ;;  %s197_s17 = smov 128   ;;  %s17_s16 = int_to_ptr.vmem [resolvable:$true] %s16_s16 }
   0x3   :  { %s198_s18 = smov 8  }
   0x4   :  { %22 = dma.hbm_to_vmem [thread:$0]  %s15_s14, 512, %s17_s16, [#allocation3], %s197_s17, %s197_s17, %s198_s18  }
   0x5   :  { %192 = dma.done.wait [#allocation3], 512  }
   0x6   :  { %193 = vsyncadd [#allocation3], 4294966784  ;;  %v199_v0 = vmov 0   ;;  %v200_v1 = vmov 1   ;;  %v201_v2 = vmov 2   ;;  %v36_v3 = vld [vmem:[#allocation2 + $0x18] sm:$0xff] }
   0x7   :  { %136 = vset.pattern.permute.xlu0 %v199_v0  ;;  %137 = vset.pattern.permute.xlu1 %v200_v1  ;;  %v37_v4 = vld [vmem:[%s246_s2] sm:$0xff]  ;;  %v35_v5 = vld [vmem:[#allocation2 + $0x10] sm:$0xff]  ;;  %v34_v6 = vld [vmem:[#allocation2 + $0x8] sm:$0xff]  ;;  %vm49_vm0 = vcmask 261120   ;;  %s113_s30 = sshll.u32 %s247_s3, 4  ;;  %s114_s30 = int_to_ptr.hbm [resolvable:$true] %s113_s30 }
   0x8   :  { %138 = vset.pattern.permute.xlu2 %v201_v2  ;;  %68 = vmatpush.msra.mxu0 %v36_v3  ;;  %v98_v7 = vld [vmem:[%s246_s2] sm:$0x1]  ;;  %v32_v10 = vld [vmem:[%s245_s1 + $0x8] sm:$0xff] }
   0x9   :  { %125 = vmatpush.msra.mxu1 %v36_v3  ;;  %41 = vperm.xlu0 %136, %v37_v4   ;;  %v33_v8 = vld [vmem:[#allocation2] sm:$0xff]  ;;  %v38_v11 = vld [vmem:[%s246_s2 + $0x8] sm:$0xff] }
   0xa   :  { %82 = vperm.xlu1 %137, %v37_v4   ;;  %69 = vmatpush.msra.mxu0 %v35_v5  ;;  %v31_v9 = vld [vmem:[%s245_s1] sm:$0xff]  ;;  %s202_s1 = smov [#allocation5]  }
   0xb   :  { %126 = vmatpush.msra.mxu1 %v35_v5  ;;  %101 = vperm.xlu2 %138, %v98_v7   ;;  %s111_s2 = sshll.u32 %s202_s1, 4  ;;  %s112_s2 = int_to_ptr.vmem [resolvable:$true] %s111_s2 }
   0xc   :  { %70 = vmatpush.msra.mxu0 %v34_v6 }
   0xd   :  { %127 = vmatpush.msra.mxu1 %v34_v6 }
   0xe   :  { %71 = vmatpush.msra.mxu0 %v33_v8 }
   0xf   :  { %128 = vmatpush.msra.mxu1 %v33_v8  ;;  %123 = vmatmul.msk.f32.vlgmr.msra.gmra.mxu0 %vm49_vm0, %v31_v9 }
  0x10   :  { %124 = vmatmul.msk.f32.vlgmr.msra.gmra.mxu1 %vm49_vm0, %v32_v10 }
  0x11   :  { %46 = vperm.xlu0 %136, %v38_v11  }
  0x12   :  { %86 = vperm.xlu1 %137, %v38_v11  }
  0x19   :  { %139 = vset.pattern.permute.xlu0 %v201_v2 }
  0x65   :  { %v102_v30 = vpop.permute.xlu2 %101 }
  0x7b   :  { %v42_v12 = vpop.permute.xlu0 %41 }
  0x7c   :  { %v83_v14 = vpop.permute.xlu1 %82 }
  0x83   :  { %v47_v13 = vpop.permute.xlu0 %46 }
  0x84   :  { %v87_v21 = vpop.permute.xlu1 %86 }
  0x8c   :  { %v73_v15 = vpop.f32.mrf.mxu0 }
  0x8d   :  { %v76_v16 = vpop.f32.mrf.mxu1  ;;  %v74_v17 = vadd.f32 %v73_v15, %v42_v12 }
  0x8e   :  { %v77_v18 = vadd.f32 %v76_v16, %v47_v13 }
  0x8f   :  { %140 = vtanh.f32 %v74_v17 }
  0x90   :  { %142 = vtanh.f32 %v77_v18 }
  0x95   :  { %v141_v19 = vpop.eup %140 }
  0x96   :  { %v143_v20 = vpop.eup %142  ;;  %v89_v22 = vmul.f32 %v141_v19, %v83_v14 }
  0x97   :  { %v90_v23 = vmul.f32 %v143_v20, %v87_v21 }
  0x99   :  { %v91_v24 = vadd.f32 %v90_v23, %v89_v22 }
  0x9b   :  { %v92_v25 = vrot.slane %v91_v24, 4 }
  0x9d   :  { %v93_v26 = vadd.f32 %v92_v25, %v91_v24 }
  0x9f   :  { %v94_v27 = vrot.slane %v93_v26, 2 }
  0xa1   :  { %v95_v28 = vadd.f32 %v94_v27, %v93_v26 }
  0xa3   :  { %v96_v29 = vrot.slane %v95_v28, 1 }
  0xa5   :  { %v97_v31 = vadd.f32 %v96_v29, %v95_v28 }
  0xa7   :  { %v104_v32 = vadd.f32 %v102_v30, %v97_v31 }
  0xa9   :  { %105 = vst [vmem:[#allocation5] sm:$0x1] %v104_v32 }
  0xaa   :  { %116 = dma.vmem_to_hbm [thread:$0]  %s112_s2, 16, %s114_s30, [#allocation4]  }
  0xab   :  { %194 = dma.done.wait [#allocation4], 16  }
  0xac   :  { %195 = vsyncadd [#allocation4], 4294967280 }
  0xad   :  { %121 = vsyncpa [#allocation3], 1 }
  0xae   :  { %122 = vsyncpa [#allocation4], 1 }

</bundles_post_ra>
